<compile_context>
chip_gen: v7x
topology: tpu7x:2x2x1
jax: 0.10.0
libtpu: 0.0.40
codegen_flags: <defaults>
</compile_context>

<pallas_src>
import functools

import jax
import jax.numpy as jnp
from jax.experimental import pallas as pl
from jax.experimental.pallas import tpu as pltpu

EPS = 1e-6        # module-level EPS in the PyTorch file
BN_EPS = 1e-5     # nn.BatchNorm2d default eps
NEG_SLOPE = 0.2


# ---------------------------------------------------------------------------
# Kernel 1: fused map_to_feat / map_to_dir / map_to_src as ONE matmul with the
# flattened position axis on lanes.  Y[2*Cout+1, P] = Wcat @ X[Cin, P].
# ---------------------------------------------------------------------------
def _matmul_kernel(x_ref, w_ref, y_ref):
    # x_ref: [cin, TP]   w_ref: [CT, cin]   y_ref: [CT, TP]
    y_ref[...] = jnp.dot(w_ref[...], x_ref[...],
                         preferred_element_type=jnp.float32)


# ---------------------------------------------------------------------------
# Kernel 2a: BN batch statistics (sum / sum-of-squares of the centered 3-norm,
# per output channel), accumulated across lane tiles of the B*M axis.
# ---------------------------------------------------------------------------
def _stats_kernel(p_ref, sum_ref, ssq_ref, *, tile, total):
    pid = pl.program_id(0)

    @pl.when(pid == 0)
    def _init():
        sum_ref[...] = jnp.zeros_like(sum_ref)
        ssq_ref[...] = jnp.zeros_like(ssq_ref)

    p = p_ref[...]                                    # [C, 3, N, T]
    m = jnp.mean(p, axis=2, keepdims=True)            # mean over N_samples
    c = p - m
    nrm = jnp.sqrt(jnp.sum(c * c, axis=1)) + EPS      # [C, N, T]

    # mask out-of-range lanes of the (possibly partial) last tile
    col = jax.lax.broadcasted_iota(jnp.int32, (1, 1, tile), 2) + pid * tile
    valid = col < total                               # [1, 1, T]
    nrm_v = jnp.where(valid, nrm, 0.0)
    sq_v = jnp.where(valid, nrm * nrm, 0.0)

    s = jnp.sum(jnp.sum(nrm_v, axis=2, keepdims=True), axis=1, keepdims=True)  # [C,1,1]
    q = jnp.sum(jnp.sum(sq_v, axis=2, keepdims=True), axis=1, keepdims=True)   # [C,1,1]
    sum_ref[...] += s
    ssq_ref[...] += q


# ---------------------------------------------------------------------------
# Kernel 2b: apply VNTBatchNorm (with precomputed per-channel scale/shift) and
# the VN leaky-ReLU, fully tiled over the B*M lane axis ('parallel').
# ---------------------------------------------------------------------------
def _apply_kernel(y_ref, scale_ref, shift_ref, out_ref, *, cout):
    y = y_ref[...]                                    # [2*cout+1, 3, N, T]
    p = y[0:cout]                                     # map_to_feat
    o = y[2 * cout:2 * cout + 1]                      # map_to_src
    d = y[cout:2 * cout] - o                          # map_to_dir - src

    # VNTBatchNorm (dim=5)
    m = jnp.mean(p, axis=2, keepdims=True)            # mean over N_samples
    c = p - m
    nrm = jnp.sqrt(jnp.sum(c * c, axis=1, keepdims=True)) + EPS   # [C,1,N,T]
    nbn = nrm * scale_ref[...] + shift_ref[...]       # BN with batch statistics
    p = c * (nbn / nrm) + m

    # VN leaky-ReLU
    dot = jnp.sum((p - o) * d, axis=1, keepdims=True)
    dns = jnp.sum(d * d, axis=1, keepdims=True)
    coef = dot / (dns + EPS)
    out_ref[...] = NEG_SLOPE * p + (1.0 - NEG_SLOPE) * jnp.where(
        dot >= 0.0, p, p - coef * d)


# ---------------------------------------------------------------------------
# Tile selection: biggest lane tile that fits a conservative VMEM budget
# (safe under the 16 MiB v5e scoped default; halves naturally fit v7x).
# ---------------------------------------------------------------------------
def _pick_lane_tile(total, per_col_bytes, target, budget=6 * 1024 * 1024):
    if total <= 128:
        return total                                  # full-dim block is allowed
    t = max(1, budget // max(per_col_bytes, 1))
    t = min(t, target)
    t = max(128, (t // 128) * 128)                    # multiple of 128 lanes
    if total <= t:
        return total
    return t


# ---------------------------------------------------------------------------
# Wrapper (glue: weight normalization, layout plumbing, BN stat finalize)
# ---------------------------------------------------------------------------
def vnt_linear_leaky_relu(x, wp0, wd0, wo0, gamma, beta):
    # x: [B, C_in, 3, N, M] (PyTorch convention). Output: [B, C_out, 3, N, M].
    B, cin, three, N, M = x.shape
    assert three == 3

    # forward-time weight normalization (which_norm_VNT='softmax')
    wp = jax.nn.softmax(wp0, axis=1)                  # (C_out, C_in)
    wd = jax.nn.softmax(wd0, axis=1)                  # (C_out, C_in)
    wo = jax.nn.softmax(wo0, axis=1)                  # (1,    C_in)
    cout = wp.shape[0]
    ct = 2 * cout + 1
    wcat = jnp.concatenate([wp, wd, wo], axis=0)      # [CT, C_in]

    bm = B * M
    q = 3 * N * bm

    # x -> [C_in, 3, N, B, M] -> [C_in, Q]   (one XLA transpose of the small x)
    xk = jnp.transpose(x, (1, 2, 3, 0, 4)).reshape(cin, q)

    # ---- kernel 1: fused matmul, positions on lanes ----
    tp = _pick_lane_tile(q, per_col_bytes=(cin + ct) * 4 * 2, target=2048)
    y = pl.pallas_call(
        _matmul_kernel,
        out_shape=jax.ShapeDtypeStruct((ct, q), jnp.float32),
        grid=(pl.cdiv(q, tp),),
        in_specs=[pl.BlockSpec((cin, tp), lambda i: (0, i)),
                  pl.BlockSpec((ct, cin), lambda i: (0, 0))],
        out_specs=pl.BlockSpec((ct, tp), lambda i: (0, i)),
        compiler_params=pltpu.CompilerParams(dimension_semantics=("parallel",)),
    )(xk, wcat)

    y4 = y.reshape(ct, 3, N, bm)                      # free reshape (no permutation)

    # lane tile over B*M shared by the two BN passes (budgeted for the apply pass)
    per_col = (3 * cout + 1) * 3 * N * 4 * 2          # in+out, double-buffered
    tm = _pick_lane_tile(bm, per_col_bytes=per_col, target=512)
    nt = pl.cdiv(bm, tm)

    # ---- kernel 2a: BN batch statistics over (B, N, M) per channel ----
    nsum, nssq = pl.pallas_call(
        functools.partial(_stats_kernel, tile=tm, total=bm),
        out_shape=(jax.ShapeDtypeStruct((cout, 1, 1), jnp.float32),
                   jax.ShapeDtypeStruct((cout, 1, 1), jnp.float32)),
        grid=(nt,),
        in_specs=[pl.BlockSpec((cout, 3, N, tm), lambda i: (0, 0, 0, i))],
        out_specs=(pl.BlockSpec((cout, 1, 1), lambda i: (0, 0, 0)),
                   pl.BlockSpec((cout, 1, 1), lambda i: (0, 0, 0))),
        compiler_params=pltpu.CompilerParams(dimension_semantics=("arbitrary",)),
    )(y4)

    cnt = float(B * N * M)
    mu = nsum.reshape(cout) / cnt
    var = jnp.maximum(nssq.reshape(cout) / cnt - mu * mu, 0.0)   # biased (training mode)
    inv_std = jax.lax.rsqrt(var + BN_EPS)
    bn_scale = (gamma * inv_std).reshape(cout, 1, 1, 1)
    bn_shift = (beta - mu * gamma * inv_std).reshape(cout, 1, 1, 1)

    # ---- kernel 2b: apply BN + VN-LeakyReLU, tiled & parallel ----
    out4 = pl.pallas_call(
        functools.partial(_apply_kernel, cout=cout),
        out_shape=jax.ShapeDtypeStruct((cout, 3, N, bm), jnp.float32),
        grid=(nt,),
        in_specs=[pl.BlockSpec((ct, 3, N, tm), lambda i: (0, 0, 0, i)),
                  pl.BlockSpec((cout, 1, 1, 1), lambda i: (0, 0, 0, 0)),
                  pl.BlockSpec((cout, 1, 1, 1), lambda i: (0, 0, 0, 0))],
        out_specs=pl.BlockSpec((cout, 3, N, tm), lambda i: (0, 0, 0, i)),
        compiler_params=pltpu.CompilerParams(dimension_semantics=("parallel",)),
    )(y4, bn_scale, bn_shift)

    out = out4.reshape(cout, 3, N, B, M)
    return jnp.transpose(out, (3, 0, 1, 2, 4))        # [B, C_out, 3, N, M]


# ---------------------------------------------------------------------------
# Pure-JAX reference (mirrors the PyTorch forward, same axis conventions)
# ---------------------------------------------------------------------------
def _reference(x, wp0, wd0, wo0, gamma, beta):
    wp = jax.nn.softmax(wp0, axis=1)
    wd = jax.nn.softmax(wd0, axis=1)
    wo = jax.nn.softmax(wo0, axis=1)
    lin = lambda xx, w: jnp.einsum('oc,bcknm->boknm', w, xx)
    p, d, o = lin(x, wp), lin(x, wd), lin(x, wo)
    mean_val = jnp.mean(p, axis=3, keepdims=True)
    pc = p - mean_val
    norm = jnp.sqrt(jnp.sum(pc * pc, axis=2)) + EPS           # [B, C, N, M]
    mu = jnp.mean(norm, axis=(0, 2, 3), keepdims=True)
    var = jnp.mean((norm - mu) ** 2, axis=(0, 2, 3), keepdims=True)
    nb = (norm - mu) / jnp.sqrt(var + BN_EPS) * gamma[None, :, None, None] \
         + beta[None, :, None, None]
    p = pc / norm[:, :, None] * nb[:, :, None] + mean_val
    d = d - o
    dot = jnp.sum((p - o) * d, axis=2, keepdims=True)
    mask = (dot >= 0).astype(jnp.float32)
    dns = jnp.sum(d * d, axis=2, keepdims=True)
    ns = NEG_SLOPE
    return ns * p + (1 - ns) * (mask * p + (1 - mask) * (p - dot / (dns + EPS) * d))


if __name__ == "__main__":
    B, Cin, Cout, N, M = 2, 4, 8, 16, 8
    key = jax.random.PRNGKey(0)
    kx, kp, kd, ko, ka = jax.random.split(key, 5)

    x = jax.random.normal(kx, (B, Cin, 3, N, M), dtype=jnp.float32)

    # deterministic parameter init mirroring VNTLinear.__init__:
    #   weight = softmax(rand(out, in), dim=1)
    wp0 = jax.nn.softmax(jax.random.uniform(kp, (Cout, Cin), jnp.float32), axis=1)
    wd0 = jax.nn.softmax(jax.random.uniform(kd, (Cout, Cin), jnp.float32), axis=1)
    wo0 = jax.nn.softmax(jax.random.uniform(ko, (1, Cin), jnp.float32), axis=1)
    _amp = jax.random.normal(ka, (1,), jnp.float32)  # 'amplification' param: unused in forward
    gamma = jnp.ones((Cout,), jnp.float32)           # BatchNorm2d default affine init
    beta = jnp.zeros((Cout,), jnp.float32)

    out = vnt_linear_leaky_relu(x, wp0, wd0, wo0, gamma, beta)
    out = jax.block_until_ready(out)
    assert out.shape == (B, Cout, 3, N, M)

    ref = _reference(x, wp0, wd0, wo0, gamma, beta)
    if not jnp.allclose(out, ref, rtol=1e-4, atol=1e-4):
        raise AssertionError("Pallas output mismatch vs JAX reference")
    print("KERNEL_OK")
</pallas_src>

<mosaic_0001>
module attributes {stable_mosaic.version = 11 : i64} {
  func.func @_matmul_kernel(%arg0: i32, %arg1: memref<4x768xf32, #tpu.memory_space<vmem>>, %arg2: memref<17x4xf32, #tpu.memory_space<vmem>>, %arg3: memref<17x768xf32, #tpu.memory_space<vmem>>) attributes {dimension_semantics = [#tpu.dimension_semantics<parallel>], iteration_bounds = array<i64: 1>, scalar_prefetch = 0 : i64, scratch_operands = 0 : i64, tpu.core_type = #tpu.core_type<tc>, window_params = [{transform_indices = @transform_0, window_bounds = array<i64: 4, 768>}, {pipeline_mode = #tpu.pipeline_mode<synchronous>, transform_indices = @transform_1, window_bounds = array<i64: 17, 4>}, {transform_indices = @transform_2, window_bounds = array<i64: 17, 768>}]} {
    %c0 = arith.constant 0 : index
    %c0_0 = arith.constant 0 : index
    %0 = vector.load %arg2[%c0, %c0_0] : memref<17x4xf32, #tpu.memory_space<vmem>>, vector<17x4xf32>
    %c0_1 = arith.constant 0 : index
    %c0_2 = arith.constant 0 : index
    %1 = vector.load %arg1[%c0_1, %c0_2] : memref<4x768xf32, #tpu.memory_space<vmem>>, vector<4x768xf32>
    %cst = arith.constant dense<0.000000e+00> : vector<17x768xf32>
    %2 = tpu.matmul %0, %1, %cst {dimension_numbers = #tpu.dot_dimension_numbers<[1], [0], [0], [1], [0, 0, 1, 1], [], []>} : vector<17x4xf32>, vector<4x768xf32>, vector<17x768xf32> -> vector<17x768xf32>
    %c0_3 = arith.constant 0 : index
    %c0_4 = arith.constant 0 : index
    %3 = vector.load %arg3[%c0_3, %c0_4] : memref<17x768xf32, #tpu.memory_space<vmem>>, vector<17x768xf32>
    tpu.vector_store %arg3[%c0_3, %c0_4], %2 {strides = array<i32>} : memref<17x768xf32, #tpu.memory_space<vmem>>, vector<17x768xf32>,
    return
  }
  func.func @transform_0(%arg0: i32) -> (i32, i32) {
    %c0_i32 = arith.constant 0 : i32
    %c0_i32_0 = arith.constant 0 : i32
    return %c0_i32, %arg0 : i32, i32
  }
  func.func @transform_1(%arg0: i32) -> (i32, i32) {
    %c0_i32 = arith.constant 0 : i32
    %c0_i32_0 = arith.constant 0 : i32
    %c0_i32_1 = arith.constant 0 : i32
    return %c0_i32, %c0_i32_0 : i32, i32
  }
  func.func @transform_2(%arg0: i32) -> (i32, i32) {
    %c0_i32 = arith.constant 0 : i32
    %c0_i32_0 = arith.constant 0 : i32
    return %c0_i32, %arg0 : i32, i32
  }
}

</mosaic_0001>

<bundles_post_ra>
// kernel: tpu_custom_call.1
= control target key start
LH: loop header
LB: loop body
LE: loop exit
PB: predicated region body
PF: predicated region fallthrough
CT: control target
= control target key end

     0   :  { %vm34_vm0 = vcmask 1043456   ;;  %v378_v3 = vmov 0.0   ;;  %vm24_vm1 = vcmask 31744   ;;  %s444_s0 = inlined_call_operand.vmem [shape: f32[4,768], index: 0, kind: input, shape index: {}]   ;;  %s445_s1 = inlined_call_operand.vmem [shape: f32[17,4], index: 1, kind: input, shape index: {}]   ;;  %s446_s2 = inlined_call_operand.hbm [shape: f32[17,768], index: 2, kind: output, shape index: {}]  }
   0x1   :  { %v15_v0 = vld [vmem:[%s444_s0] sm:$0xff]  ;;  %v16_v1 = vld [vmem:[%s444_s0 + $0x8] sm:$0xff]  ;;  %117 = vmatprep.mubr.f32.mxu1 %v378_v3  ;;  %111 = vmatprep.mubr.f32.mxu0 %v378_v3  ;;  %v17_v5 = vld [vmem:[%s444_s0 + $0x10] sm:$0xff] }
   0x2   :  { %v21_v2 = vcombine.high %v15_v0, %v15_v0  ;;  %v22_v4 = vcombine.high %v16_v1, %v16_v1  ;;  %v13_v6 = vld [vmem:[%s445_s1 + $0x8] sm:$0xff] }
   0x3   :  { %7 = vsyncpa [#allocation3], 0  ;;  %v23_v7 = vcombine.high %v17_v5, %v17_v5  ;;  %v12_v8 = vld [vmem:[%s445_s1] sm:$0xff]  ;;  %v14_v9 = vld [vmem:[%s445_s1 + $0x10] sm:$0x1]  ;;  %s379_s1 = smov [#allocation2]  }
   0x4   :  { %345 = vmatprep.subr.msk.mxu1 %vm34_vm0, %v21_v2  ;;  %330 = vmatprep.subr.msk.mxu0 %vm34_vm0, %v21_v2  ;;  %s319_s20 = sshll.u32 %s379_s1, 4  ;;  %s320_s20 = int_to_ptr.vmem [resolvable:$true] %s319_s20 }
   0x5   :  { %346 = vmatpush1.msk.msra.mxu1 %vm34_vm0, %v15_v0  ;;  %331 = vmatpush1.msk.msra.mxu0 %vm34_vm0, %v15_v0  ;;  %s354_s21 = scalar_lea.vmem %s320_s20, 2304  ;;  %p359_p1 = scmp.lt.s32.totalorder %s320_s20, %s320_s20 }
   0x6   :  { %333 = vmatmul.mubr.msk.f32.vlgmr.msra.gmra.mrb[0].mxu1 %vm24_vm1, %v13_v6  ;;  %335 = vmatprep.subr.msk.mxu1 %vm34_vm0, %v22_v4  ;;  %p355_p0 = scmp.ne.s32.totalorder %s320_s20, %s354_s21  ;;  %p360_p2 = scmp.lt.s32.totalorder %s354_s21, %s354_s21 }
   0x7   :  { %336 = vmatpush1.msk.msra.mxu1 %vm34_vm0, %v16_v1  ;;  %123 = vmatprep.mubr.f32.mxu1 %v378_v3 }
   0x8   :  { %332 = vmatmul.mubr.msk.f32.vlgmr.msra.gmra.mrb[0].mxu0 %vm24_vm1, %v12_v8  ;;  %340 = vmatprep.subr.msk.mxu0 %vm34_vm0, %v23_v7  ;;  %p361_p3 = por %p360_p2, %p359_p1 }
   0x9   :  { %341 = vmatpush1.msk.msra.mxu0 %vm34_vm0, %v17_v5  ;;  %277 = vmatprep.mubr.f32.mxu0 %v378_v3 }
   0xa   :  { %334 = vmatmul.mubr.msk.f32.gmra.mrb[2].mxu1 %vm24_vm1, %v14_v9  ;;  %p362_p4 = pnand %p361_p3, %p355_p0 }
   0xb   :  { %194 = vmatprep.mubr.f32.mxu1 %v378_v3 }
   0xc   :  { %342 = vmatmul.mubr.msk.f32.vlgmr.msra.gmra.mrb[2].mxu0 %vm24_vm1, %v12_v8 }
   0xd   :  { %283 = vmatprep.mubr.f32.mxu0 %v378_v3 }
   0xe   :  { %337 = vmatmul.mubr.msk.f32.vlgmr.msra.gmra.mrb[4].mxu1 %vm24_vm1, %v12_v8 }
   0xf   :  { %200 = vmatprep.mubr.f32.mxu1 %v378_v3 }
  0x10   :  { %343 = vmatmul.mubr.msk.f32.gmra.mrb[4].mxu0 %vm24_vm1, %v13_v6 }
  0x11   :  { %289 = vmatprep.mubr.f32.mxu0 %v378_v3 }
  0x12   :  { %338 = vmatmul.mubr.msk.f32.gmra.mrb[6].mxu1 %vm24_vm1, %v13_v6 }
  0x13   :  { %206 = vmatprep.mubr.f32.mxu1 %v378_v3 }
  0x14   :  { %344 = vmatmul.mubr.msk.f32.gmra.mrb[6].mxu0 %vm24_vm1, %v14_v9 }
  0x16   :  { %339 = vmatmul.mubr.msk.f32.gmra.mrb[8].mxu1 %vm24_vm1, %v14_v9 }
  0xd9   :  { %v119_v10 = vpop.f32.mrb[0].mxu1 }
  0xda   :  { %302 = vst [vmem:[#allocation2 + $0x30] sm:$0xff] %v119_v10  ;;  %v121_v11 = vpop.f32.mrb[1].mxu1 }
  0xdb   :  { %303 = vst [vmem:[#allocation2 + $0x38] sm:$0xff] %v121_v11  ;;  %v113_v12 = vpop.f32.mrb[0].mxu0 }
  0xdc   :  { %296 = vst [vmem:[#allocation2] sm:$0xff] %v113_v12  ;;  %v115_v13 = vpop.f32.mrb[1].mxu0 }
  0xdd   :  { %v125_v14 = vpop.f32.mrb[2].mxu1  ;;  %297 = vst [vmem:[#allocation2 + $0x8] sm:$0xff] %v115_v13 }
  0xde   :  { %308 = vst [vmem:[#allocation2 + $0x60] sm:$0x1] %v125_v14  ;;  %v127_v15 = vpop.f32.mrb[3].mxu1 }
  0xdf   :  { %309 = vst [vmem:[#allocation2 + $0x68] sm:$0x1] %v127_v15  ;;  %v279_v16 = vpop.f32.mrb[2].mxu0 }
  0xe0   :  { %300 = vst [vmem:[#allocation2 + $0x20] sm:$0xff] %v279_v16  ;;  %v281_v17 = vpop.f32.mrb[3].mxu0 }
  0xe1   :  { %v196_v18 = vpop.f32.mrb[4].mxu1  ;;  %301 = vst [vmem:[#allocation2 + $0x28] sm:$0xff] %v281_v17 }
  0xe2   :  { %298 = vst [vmem:[#allocation2 + $0x10] sm:$0xff] %v196_v18  ;;  %v198_v19 = vpop.f32.mrb[5].mxu1 }
  0xe3   :  { %299 = vst [vmem:[#allocation2 + $0x18] sm:$0xff] %v198_v19  ;;  %v285_v20 = vpop.f32.mrb[4].mxu0 }
  0xe4   :  { %306 = vst [vmem:[#allocation2 + $0x50] sm:$0xff] %v285_v20  ;;  %v287_v21 = vpop.f32.mrb[5].mxu0 }
  0xe5   :  { %v202_v22 = vpop.f32.mrb[6].mxu1  ;;  %307 = vst [vmem:[#allocation2 + $0x58] sm:$0xff] %v287_v21 }
  0xe6   :  { %304 = vst [vmem:[#allocation2 + $0x40] sm:$0xff] %v202_v22  ;;  %v204_v23 = vpop.f32.mrb[7].mxu1 }
  0xe7   :  { %305 = vst [vmem:[#allocation2 + $0x48] sm:$0xff] %v204_v23  ;;  %v291_v24 = vpop.f32.mrb[6].mxu0 }
  0xe8   :  { %312 = vst [vmem:[#allocation2 + $0x80] sm:$0x1] %v291_v24  ;;  %v293_v25 = vpop.f32.mrb[7].mxu0 }
  0xe9   :  { %v208_v26 = vpop.f32.mrb[8].mxu1  ;;  %313 = vst [vmem:[#allocation2 + $0x88] sm:$0x1] %v293_v25 }
  0xea   :  { %310 = vst [vmem:[#allocation2 + $0x70] sm:$0x1] %v208_v26  ;;  %v210_v27 = vpop.f32.mrb[9].mxu1 }
  0xeb   :  { %311 = vst [vmem:[#allocation2 + $0x78] sm:$0x1] %v210_v27 }
  0xec   :  { %365 = shalt.err (!%p362_p4)
}
  0xed   :  { %s366_s24 = scalar_lea.hbm %s446_s2, 2304 }
  0xee   :  { %p367_p5 = scmp.ne.s32.totalorder %s446_s2, %s366_s24  ;;  %p370_p6 = scmp.lt.u32.totalorder %s366_s24, %s446_s2 }
  0xf0   :  { %p372_p7 = pnand %p370_p6, %p367_p5 }
  0xf2   :  { %375 = shalt.err (!%p372_p7)
}
  0xf3   :  { %s380_s29 = smov 768   ;;  %s381_s30 = smov 48  }
  0xf4   :  { %325 = dma.vmem_to_hbm [thread:$0]  %s320_s20, 2304, %s446_s2, [#allocation3], %s380_s29, %s380_s29, %s381_s30  }
  0xf5   :  { %376 = dma.done.wait [#allocation3], 2304  }
  0xf6   :  { %377 = vsyncadd [#allocation3], 4294964992 }
  0xf7   :  { %329 = vsyncpa [#allocation3], 1 }

</bundles_post_ra>
